<compile_context>
chip_gen: v6e
topology: v6e:2x2x1
jax: 0.10.0
libtpu: 0.0.40
codegen_flags: <defaults>
</compile_context>

<pallas_src>
import jax
import jax.numpy as jnp
from jax.experimental import pallas as pl
from jax.experimental.pallas import tpu as pltpu

HIDDEN = 64                      # per spec (torch module uses hidden_dim = 64)
VMEM_BUDGET_BYTES = 24 << 20     # headroom under v7x's 32 MiB scoped default
MIN_ROWS_FOR_SPLIT = 2048        # only force >=2 grid steps for big batches


def _critic_kernel(x_ref, a_ref, w1x_ref, w1a_ref, b1_ref,
                   w2_ref, b2_ref, w3_ref, b3_ref, out_ref):
    # fc1 on the fused concat: [x, a] @ W1 == x @ W1_x + a @ W1_a
    # Activations cast to bf16 in-kernel; weights are already bf16.
    # f32 accumulation; bias add + ReLU in f32 on the VPU.
    x_bf = x_ref[...].astype(jnp.bfloat16)
    a_bf = a_ref[...].astype(jnp.bfloat16)
    h1 = (jnp.dot(x_bf, w1x_ref[...], preferred_element_type=jnp.float32)
          + jnp.dot(a_bf, w1a_ref[...], preferred_element_type=jnp.float32)
          + b1_ref[...])
    h1 = jnp.maximum(h1, 0.0)

    # fc2 + ReLU
    h2 = jnp.dot(h1.astype(jnp.bfloat16), w2_ref[...],
                 preferred_element_type=jnp.float32) + b2_ref[...]
    h2 = jnp.maximum(h2, 0.0)

    # fc_out: narrow (64, 1) head, narrow (tb, 1) store.
    out_ref[...] = (jnp.dot(h2.astype(jnp.bfloat16), w3_ref[...],
                            preferred_element_type=jnp.float32)
                    + b3_ref[...])


def _round_up(n, m):
    return ((n + m - 1) // m) * m


def init_params(key, state_dim, action_dim, hidden_dim=HIDDEN):
    """Deterministic synthetic init (uniform, PyTorch-Linear-like bounds). f32."""
    keys = jax.random.split(key, 6)
    in1 = state_dim + action_dim

    def lin(kw, kb, fan_in, fan_out):
        bound = 1.0 / jnp.sqrt(jnp.float32(fan_in))
        w = jax.random.uniform(kw, (fan_in, fan_out), jnp.float32, -bound, bound)
        b = jax.random.uniform(kb, (1, fan_out), jnp.float32, -bound, bound)
        return w, b

    w1, b1 = lin(keys[0], keys[1], in1, hidden_dim)
    w2, b2 = lin(keys[2], keys[3], hidden_dim, hidden_dim)
    w3, b3 = lin(keys[4], keys[5], hidden_dim, 1)
    return dict(w1=w1, b1=b1, w2=w2, b2=b2, w3=w3, b3=b3)


def prepare_params(params, state_dim):
    """One-time weight prep (done at init / after each optimizer update),
    NOT in the forward path: split w1 for the fused concat and cast all
    weight matrices to bf16. Biases stay f32."""
    w1, b1, w2, b2, w3, b3 = (params[k] for k in
                              ("w1", "b1", "w2", "b2", "w3", "b3"))
    return dict(
        w1x=w1[:state_dim].astype(jnp.bfloat16),
        w1a=w1[state_dim:].astype(jnp.bfloat16),
        b1=b1.astype(jnp.float32),
        w2=w2.astype(jnp.bfloat16),
        b2=b2.astype(jnp.float32),
        w3=w3.astype(jnp.bfloat16),
        b3=b3.astype(jnp.float32),
    )


def critic_forward(x, a, prepared, block_b=4096):
    """x: (B, state_dim) f32, a: (B, action_dim) f32 -> (B, 1) f32."""
    w1x, w1a, b1 = prepared["w1x"], prepared["w1a"], prepared["b1"]
    w2, b2 = prepared["w2"], prepared["b2"]
    w3, b3 = prepared["w3"], prepared["b3"]

    B, state_dim = x.shape
    action_dim = a.shape[1]

    # ---- Batch tile selection -------------------------------------------
    b8 = _round_up(B, 8)
    tb = min(block_b, b8)
    # v7x megacore: for big batches ensure >= 2 grid steps so the "parallel"
    # batch axis can be sharded across both TensorCores.
    if b8 >= MIN_ROWS_FOR_SPLIT:
        tb = min(tb, _round_up((b8 + 1) // 2, 8))
    # VMEM budget (v7x-safe): double-buffered x, a, out per step.
    per_row_bytes = 4 * (state_dim + action_dim + 1)
    tb_vmem_cap = max(8, (VMEM_BUDGET_BYTES // (2 * per_row_bytes)) // 8 * 8)
    tb = max(8, min(tb, tb_vmem_cap))

    b_pad = _round_up(B, tb)
    if b_pad != B:
        pad = ((0, b_pad - B), (0, 0))
        x = jnp.pad(x, pad)
        a = jnp.pad(a, pad)

    grid = (b_pad // tb,)

    # Weights / biases stay VMEM-resident across grid steps.
    def resident(arr):
        return pl.BlockSpec(arr.shape, lambda i: (0, 0))

    flops = 2 * b_pad * ((state_dim + action_dim) * HIDDEN
                         + HIDDEN * HIDDEN + HIDDEN * 1)
    bytes_accessed = (b_pad * (state_dim + action_dim) * 4      # x, a (f32)
                      + b_pad * 4                               # output (f32)
                      + 2 * sum(int(v.size) for v in (w1x, w1a, w2, w3))
                      + 4 * sum(int(v.size) for v in (b1, b2, b3)))

    out = pl.pallas_call(
        _critic_kernel,
        out_shape=jax.ShapeDtypeStruct((b_pad, 1), jnp.float32),
        grid=grid,
        in_specs=[
            pl.BlockSpec((tb, state_dim), lambda i: (i, 0)),
            pl.BlockSpec((tb, action_dim), lambda i: (i, 0)),
            resident(w1x), resident(w1a), resident(b1),
            resident(w2), resident(b2),
            resident(w3), resident(b3),
        ],
        out_specs=pl.BlockSpec((tb, 1), lambda i: (i, 0)),
        compiler_params=pltpu.CompilerParams(
            dimension_semantics=("parallel",)),
        cost_estimate=pl.CostEstimate(
            flops=flops, transcendentals=0, bytes_accessed=bytes_accessed),
    )(x, a, w1x, w1a, b1, w2, b2, w3, b3)

    # Padded batch rows carry relu(bias)-derived junk — keep this slice.
    return out[:B]


def critic_ref(x, a, params):
    """Pure-JAX f32 reference (PyTorch semantics) for correctness check."""
    xa = jnp.concatenate([x, a], axis=1)
    h1 = jnp.maximum(xa @ params["w1"] + params["b1"], 0.0)
    h2 = jnp.maximum(h1 @ params["w2"] + params["b2"], 0.0)
    return h2 @ params["w3"] + params["b3"]


if __name__ == "__main__":
    state_dim, action_dim, batch = 16, 8, 20   # batch not a multiple of 8 on purpose

    key = jax.random.PRNGKey(0)
    kx, ka, kp = jax.random.split(key, 3)
    x = jax.random.normal(kx, (batch, state_dim), jnp.float32)
    a = jax.random.normal(ka, (batch, action_dim), jnp.float32)
    params = init_params(kp, state_dim, action_dim)
    prepared = prepare_params(params, state_dim)   # one-time, outside forward

    ref = critic_ref(x, a, params)

    # Single-tile path (tb covers the whole padded batch).
    out = jax.block_until_ready(critic_forward(x, a, prepared))
    assert out.shape == (batch, 1), out.shape
    assert jnp.allclose(out, ref, atol=5e-2, rtol=5e-2), (out, ref)

    # Multi-step grid path (small batch tile -> 3 grid steps + batch padding).
    out_grid = jax.block_until_ready(critic_forward(x, a, prepared, block_b=8))
    assert out_grid.shape == (batch, 1), out_grid.shape
    assert jnp.allclose(out_grid, ref, atol=5e-2, rtol=5e-2), (out_grid, ref)

    print("KERNEL_OK")
</pallas_src>

<mosaic_0001>
module attributes {stable_mosaic.version = 11 : i64} {
  func.func @_critic_kernel(%arg0: i32, %arg1: memref<24x16xf32, #tpu.memory_space<vmem>>, %arg2: memref<24x8xf32, #tpu.memory_space<vmem>>, %arg3: memref<16x64xbf16, #tpu.memory_space<vmem>>, %arg4: memref<8x64xbf16, #tpu.memory_space<vmem>>, %arg5: memref<1x64xf32, #tpu.memory_space<vmem>>, %arg6: memref<64x64xbf16, #tpu.memory_space<vmem>>, %arg7: memref<1x64xf32, #tpu.memory_space<vmem>>, %arg8: memref<64x1xbf16, #tpu.memory_space<vmem>>, %arg9: memref<1x1xf32, #tpu.memory_space<vmem>>, %arg10: memref<24x1xf32, #tpu.memory_space<vmem>>) attributes {dimension_semantics = [#tpu.dimension_semantics<parallel>], iteration_bounds = array<i64: 1>, scalar_prefetch = 0 : i64, scratch_operands = 0 : i64, tpu.core_type = #tpu.core_type<tc>, window_params = [{transform_indices = @transform_0, window_bounds = array<i64: 24, 16>}, {transform_indices = @transform_1, window_bounds = array<i64: 24, 8>}, {pipeline_mode = #tpu.pipeline_mode<synchronous>, transform_indices = @transform_2, window_bounds = array<i64: 16, 64>}, {pipeline_mode = #tpu.pipeline_mode<synchronous>, transform_indices = @transform_3, window_bounds = array<i64: 8, 64>}, {pipeline_mode = #tpu.pipeline_mode<synchronous>, transform_indices = @transform_4, window_bounds = array<i64: 1, 64>}, {pipeline_mode = #tpu.pipeline_mode<synchronous>, transform_indices = @transform_5, window_bounds = array<i64: 64, 64>}, {pipeline_mode = #tpu.pipeline_mode<synchronous>, transform_indices = @transform_6, window_bounds = array<i64: 1, 64>}, {pipeline_mode = #tpu.pipeline_mode<synchronous>, transform_indices = @transform_7, window_bounds = array<i64: 64, 1>}, {pipeline_mode = #tpu.pipeline_mode<synchronous>, transform_indices = @transform_8, window_bounds = array<i64: 1, 1>}, {transform_indices = @transform_9, window_bounds = array<i64: 24, 1>}]} {
    %c0 = arith.constant 0 : index
    %c0_0 = arith.constant 0 : index
    %0 = vector.load %arg1[%c0, %c0_0] : memref<24x16xf32, #tpu.memory_space<vmem>>, vector<24x16xf32>
    %1 = arith.truncf %0 : vector<24x16xf32> to vector<24x16xbf16>
    %c0_1 = arith.constant 0 : index
    %c0_2 = arith.constant 0 : index
    %2 = vector.load %arg2[%c0_1, %c0_2] : memref<24x8xf32, #tpu.memory_space<vmem>>, vector<24x8xf32>
    %3 = arith.truncf %2 : vector<24x8xf32> to vector<24x8xbf16>
    %c0_3 = arith.constant 0 : index
    %c0_4 = arith.constant 0 : index
    %4 = vector.load %arg3[%c0_3, %c0_4] : memref<16x64xbf16, #tpu.memory_space<vmem>>, vector<16x64xbf16>
    %cst = arith.constant dense<0.000000e+00> : vector<24x64xf32>
    %5 = tpu.matmul %1, %4, %cst {dimension_numbers = #tpu.dot_dimension_numbers<[1], [0], [0], [1], [0, 0, 1, 1], [], []>} : vector<24x16xbf16>, vector<16x64xbf16>, vector<24x64xf32> -> vector<24x64xf32>
    %c0_5 = arith.constant 0 : index
    %c0_6 = arith.constant 0 : index
    %6 = vector.load %arg4[%c0_5, %c0_6] : memref<8x64xbf16, #tpu.memory_space<vmem>>, vector<8x64xbf16>
    %cst_7 = arith.constant dense<0.000000e+00> : vector<24x64xf32>
    %7 = tpu.matmul %3, %6, %cst_7 {dimension_numbers = #tpu.dot_dimension_numbers<[1], [0], [0], [1], [0, 0, 1, 1], [], []>} : vector<24x8xbf16>, vector<8x64xbf16>, vector<24x64xf32> -> vector<24x64xf32>
    %8 = arith.addf %5, %7 : vector<24x64xf32>
    %c0_8 = arith.constant 0 : index
    %c0_9 = arith.constant 0 : index
    %9 = vector.load %arg5[%c0_8, %c0_9] : memref<1x64xf32, #tpu.memory_space<vmem>>, vector<1x64xf32>
    %10 = vector.broadcast %9 : vector<1x64xf32> to vector<24x64xf32>
    %11 = arith.addf %8, %10 : vector<24x64xf32>
    %cst_10 = arith.constant 0.000000e+00 : f32
    %12 = vector.broadcast %cst_10 : f32 to vector<24x64xf32>
    %13 = arith.maximumf %11, %12 : vector<24x64xf32>
    %14 = arith.truncf %13 : vector<24x64xf32> to vector<24x64xbf16>
    %c0_11 = arith.constant 0 : index
    %c0_12 = arith.constant 0 : index
    %15 = vector.load %arg6[%c0_11, %c0_12] : memref<64x64xbf16, #tpu.memory_space<vmem>>, vector<64x64xbf16>
    %cst_13 = arith.constant dense<0.000000e+00> : vector<24x64xf32>
    %16 = tpu.matmul %14, %15, %cst_13 {dimension_numbers = #tpu.dot_dimension_numbers<[1], [0], [0], [1], [0, 0, 1, 1], [], []>} : vector<24x64xbf16>, vector<64x64xbf16>, vector<24x64xf32> -> vector<24x64xf32>
    %c0_14 = arith.constant 0 : index
    %c0_15 = arith.constant 0 : index
    %17 = vector.load %arg7[%c0_14, %c0_15] : memref<1x64xf32, #tpu.memory_space<vmem>>, vector<1x64xf32>
    %18 = vector.broadcast %17 : vector<1x64xf32> to vector<24x64xf32>
    %19 = arith.addf %16, %18 : vector<24x64xf32>
    %cst_16 = arith.constant 0.000000e+00 : f32
    %20 = vector.broadcast %cst_16 : f32 to vector<24x64xf32>
    %21 = arith.maximumf %19, %20 : vector<24x64xf32>
    %22 = arith.truncf %21 : vector<24x64xf32> to vector<24x64xbf16>
    %c0_17 = arith.constant 0 : index
    %c0_18 = arith.constant 0 : index
    %23 = vector.load %arg8[%c0_17, %c0_18] : memref<64x1xbf16, #tpu.memory_space<vmem>>, vector<64x1xbf16>
    %cst_19 = arith.constant dense<0.000000e+00> : vector<24x1xf32>
    %24 = tpu.matmul %22, %23, %cst_19 {dimension_numbers = #tpu.dot_dimension_numbers<[1], [0], [0], [1], [0, 0, 1, 1], [], []>} : vector<24x64xbf16>, vector<64x1xbf16>, vector<24x1xf32> -> vector<24x1xf32>
    %c0_20 = arith.constant 0 : index
    %c0_21 = arith.constant 0 : index
    %25 = vector.load %arg9[%c0_20, %c0_21] : memref<1x1xf32, #tpu.memory_space<vmem>>, vector<1x1xf32>
    %26 = vector.broadcast %25 : vector<1x1xf32> to vector<24x1xf32>
    %27 = arith.addf %24, %26 : vector<24x1xf32>
    %c0_22 = arith.constant 0 : index
    %c0_23 = arith.constant 0 : index
    %28 = vector.load %arg10[%c0_22, %c0_23] : memref<24x1xf32, #tpu.memory_space<vmem>>, vector<24x1xf32>
    tpu.vector_store %arg10[%c0_22, %c0_23], %27 {strides = array<i32>} : memref<24x1xf32, #tpu.memory_space<vmem>>, vector<24x1xf32>,
    return
  }
  func.func @transform_0(%arg0: i32) -> (i32, i32) {
    %c0_i32 = arith.constant 0 : i32
    %c0_i32_0 = arith.constant 0 : i32
    return %arg0, %c0_i32 : i32, i32
  }
  func.func @transform_1(%arg0: i32) -> (i32, i32) {
    %c0_i32 = arith.constant 0 : i32
    %c0_i32_0 = arith.constant 0 : i32
    return %arg0, %c0_i32 : i32, i32
  }
  func.func @transform_2(%arg0: i32) -> (i32, i32) {
    %c0_i32 = arith.constant 0 : i32
    %c0_i32_0 = arith.constant 0 : i32
    %c0_i32_1 = arith.constant 0 : i32
    return %c0_i32, %c0_i32_0 : i32, i32
  }
  func.func @transform_3(%arg0: i32) -> (i32, i32) {
    %c0_i32 = arith.constant 0 : i32
    %c0_i32_0 = arith.constant 0 : i32
    %c0_i32_1 = arith.constant 0 : i32
    return %c0_i32, %c0_i32_0 : i32, i32
  }
  func.func @transform_4(%arg0: i32) -> (i32, i32) {
    %c0_i32 = arith.constant 0 : i32
    %c0_i32_0 = arith.constant 0 : i32
    %c0_i32_1 = arith.constant 0 : i32
    return %c0_i32, %c0_i32_0 : i32, i32
  }
  func.func @transform_5(%arg0: i32) -> (i32, i32) {
    %c0_i32 = arith.constant 0 : i32
    %c0_i32_0 = arith.constant 0 : i32
    %c0_i32_1 = arith.constant 0 : i32
    return %c0_i32, %c0_i32_0 : i32, i32
  }
  func.func @transform_6(%arg0: i32) -> (i32, i32) {
    %c0_i32 = arith.constant 0 : i32
    %c0_i32_0 = arith.constant 0 : i32
    %c0_i32_1 = arith.constant 0 : i32
    return %c0_i32, %c0_i32_0 : i32, i32
  }
  func.func @transform_7(%arg0: i32) -> (i32, i32) {
    %c0_i32 = arith.constant 0 : i32
    %c0_i32_0 = arith.constant 0 : i32
    %c0_i32_1 = arith.constant 0 : i32
    return %c0_i32, %c0_i32_0 : i32, i32
  }
  func.func @transform_8(%arg0: i32) -> (i32, i32) {
    %c0_i32 = arith.constant 0 : i32
    %c0_i32_0 = arith.constant 0 : i32
    %c0_i32_1 = arith.constant 0 : i32
    return %c0_i32, %c0_i32_0 : i32, i32
  }
  func.func @transform_9(%arg0: i32) -> (i32, i32) {
    %c0_i32 = arith.constant 0 : i32
    %c0_i32_0 = arith.constant 0 : i32
    return %arg0, %c0_i32 : i32, i32
  }
}

</mosaic_0001>

<bundles_post_ra>
// kernel: tpu_custom_call.1
= control target key start
LH: loop header
LB: loop body
LE: loop exit
PB: predicated region body
PF: predicated region fallthrough
CT: control target
= control target key end

     0   :  { %vm55_vm0 = vcmask 1043456   ;;  %vm48_vm1 = vcmask 64512   ;;  %vm113_vm2 = vcmask 130048   ;;  %vm222_vm3 = vcmask 523264   ;;  %s587_s3 = inlined_call_operand.vmem [shape: bf16[8,64], index: 3, kind: input, shape index: {}]   ;;  %s588_s2 = inlined_call_operand.vmem [shape: bf16[16,64], index: 2, kind: input, shape index: {}]   ;;  %s589_s1 = inlined_call_operand.vmem [shape: f32[24,8], index: 1, kind: input, shape index: {}]   ;;  %s590_s0 = inlined_call_operand.vmem [shape: f32[24,16], index: 0, kind: input, shape index: {}]   ;;  %s591_s5 = inlined_call_operand.vmem [shape: bf16[64,64], index: 5, kind: input, shape index: {}]   ;;  %s592_s7 = inlined_call_operand.vmem [shape: bf16[64,1], index: 7, kind: input, shape index: {}]   ;;  %s593_s4 = inlined_call_operand.vmem [shape: f32[1,64], index: 4, kind: input, shape index: {}]   ;;  %s594_s8 = inlined_call_operand.<no memory space> [shape: f32[1,1], index: 8, kind: input, shape index: {}]   ;;  %s595_s6 = inlined_call_operand.vmem [shape: f32[1,64], index: 6, kind: input, shape index: {}]   ;;  %s596_s9 = inlined_call_operand.vmem [shape: f32[24,1], index: 9, kind: output, shape index: {}]  }
   0x1   :  { %v47_v0 = vld [vmem:[%s587_s3] sm:$0xf]  ;;  %v41_v4 = vld [vmem:[%s589_s1 + $0x8] sm:$0xff]  ;;  %v42_v5 = vld [vmem:[%s589_s1 + $0x10] sm:$0xff]  ;;  %v14_v41 = vstv %s594_s8  ;;  %vm375_vm4 = vcmask 7168  }
   0x2   :  { %457 = vmatprep.subr.msk.bf16.mxu0 %vm55_vm0, %v47_v0  ;;  %v57_v1 = vsel %vm55_vm0, %v47_v0, 0  ;;  %v458_v2 = vld [vmem:[%s588_s2] sm:$0xff]   ;;  %v36_v8 = vld [vmem:[%s590_s0 + $0x8] sm:$0xff]  ;;  %v44_v9 = vpack.c.bf16 %v42_v5, %v42_v5  ;;  %v37_v10 = vld [vmem:[%s590_s0 + $0x10] sm:$0xff]  ;;  %15 = vst [vmem:[#allocation2] sm:$0x1] %v14_v41 }
   0x3   :  { %v40_v3 = vld [vmem:[%s589_s1] sm:$0xff]  ;;  %422 = vmatpush3.bf16.msra.mxu0 %v57_v1  ;;  %427 = vmatprep.subr.bf16.mxu1 %v458_v2  ;;  %v39_v12 = vpack.c.bf16 %v37_v10, %v37_v10  ;;  %v459_v13 = vld [vmem:[%s591_s5 + $0x18] sm:$0xff]   ;;  %v460_v14 = vld [vmem:[%s591_s5 + $0x10] sm:$0xff]  }
   0x4   :  { %v43_v6 = vpack.c.bf16 %v41_v4, %v40_v3  ;;  %v35_v7 = vld [vmem:[%s590_s0] sm:$0xff]  ;;  %428 = vmatpush3.bf16.msra.mxu1 %v458_v2  ;;  %433 = vmatprep.subr.bf16.mxu0 %v459_v13  ;;  %v461_v15 = vld [vmem:[%s591_s5 + $0x8] sm:$0xff]   ;;  %v463_v17 = vld [vmem:[%s592_s7 + $0x18] sm:$0xff]  }
   0x5   :  { %v38_v11 = vpack.c.bf16 %v36_v8, %v35_v7  ;;  %v462_v16 = vld [vmem:[%s591_s5] sm:$0xff]   ;;  %445 = vmatprep.subr.bf16.mxu1 %v463_v17  ;;  %v464_v38 = vld [vmem:[%s592_s7 + $0x10] sm:$0xff]   ;;  %v465_v39 = vld [vmem:[%s592_s7 + $0x8] sm:$0xff]  }
   0x6   :  { %423 = vmatprep.mubr.msk.bf16.mxu0 %vm48_vm1, %v43_v6  ;;  %v388_v24 = vld [vmem:[%s593_s4] ss:$0 sm:$0xff] }
   0x7   :  { %424 = vmatmul.mubr.msk.bf16.vlgmr.msra.gmra.mxu0 %vm48_vm1, %v44_v9  ;;  %429 = vmatprep.mubr.msk.bf16.mxu1 %vm113_vm2, %v38_v11  ;;  %v466_v40 = vld [vmem:[%s592_s7] sm:$0xff]  }
   0x8   :  { %430 = vmatmul.mubr.msk.bf16.vlgmr.msra.gmra.mxu1 %vm113_vm2, %v39_v12  ;;  %434 = vmatpush3.bf16.msra.mxu0 %v459_v13  ;;  %v389_v43 = vld [vmem:[%s595_s6] ss:$0 sm:$0xff] }
   0x9   :  { %435 = vmatprep.subr.bf16.mxu0 %v460_v14  ;;  %446 = vmatpush3.bf16.msra.mxu1 %v463_v17  ;;  %v396_v55 = vld [vmem:[#allocation2] ss:$0 sm:$0xff] }
   0xa   :  { %447 = vmatprep.subr.bf16.mxu1 %v464_v38 }
   0xc   :  { %436 = vmatpush3.bf16.msra.mxu0 %v460_v14 }
   0xd   :  { %437 = vmatprep.subr.bf16.mxu0 %v461_v15  ;;  %448 = vmatpush3.bf16.msra.mxu1 %v464_v38 }
   0xe   :  { %449 = vmatprep.subr.bf16.mxu1 %v465_v39 }
  0x10   :  { %438 = vmatpush3.bf16.msra.mxu0 %v461_v15 }
  0x11   :  { %439 = vmatprep.subr.bf16.mxu0 %v462_v16  ;;  %450 = vmatpush3.bf16.msra.mxu1 %v465_v39 }
  0x12   :  { %451 = vmatprep.subr.bf16.mxu1 %v466_v40 }
  0x14   :  { %440 = vmatpush3.bf16.msra.mxu0 %v462_v16 }
  0x15   :  { %452 = vmatpush3.bf16.msra.mxu1 %v466_v40 }
  0xc7   :  { %v425_v18 = vpop.f32.mrf.mxu0 }
  0xc8   :  { %v431_v20 = vpop.f32.mrf.mxu1 }
  0xc9   :  { %v93_v19 = vpop.f32.mrf.mxu0  ;;  %v163_v21 = vadd.f32 %v431_v20, %v425_v18 }
  0xca   :  { %v154_v23 = vpop.f32.mrf.mxu1 }
  0xcb   :  { %v426_v22 = vpop.f32.mrf.mxu0  ;;  %v155_v25 = vadd.f32 %v154_v23, %v93_v19  ;;  %v177_v28 = vadd.f32 %v388_v24, %v163_v21 }
  0xcc   :  { %v432_v27 = vpop.f32.mrf.mxu1 }
  0xcd   :  { %v96_v26 = vpop.f32.mrf.mxu0  ;;  %v175_v30 = vadd.f32 %v388_v24, %v155_v25  ;;  %v180_v33 = vmax.f32 %v177_v28, 0.0 }
  0xce   :  { %v157_v29 = vpop.f32.mrf.mxu1 }
  0xcf   :  { %v158_v31 = vadd.f32 %v157_v29, %v96_v26  ;;  %v178_v34 = vmax.f32 %v175_v30, 0.0  ;;  %v182_v37 = vpack.c.bf16 %v180_v33, %v180_v33 }
  0xd1   :  { %v176_v32 = vadd.f32 %v388_v24, %v158_v31 }
  0xd3   :  { %v179_v35 = vmax.f32 %v176_v32, 0.0 }
  0xd5   :  { %v181_v36 = vpack.c.bf16 %v179_v35, %v178_v34 }
  0xd7   :  { %441 = vmatprep.mubr.msk.bf16.mxu0 %vm222_vm3, %v181_v36 }
  0xd8   :  { %442 = vmatmul.mubr.msk.bf16.vlgmr.msra.gmra.mxu0 %vm222_vm3, %v182_v37 }
 0x198   :  { %v443_v42 = vpop.f32.mrf.mxu0 }
 0x199   :  { %v272_v45 = vadd.f32 %v443_v42, %v389_v43 }
 0x19a   :  { %v263_v44 = vpop.f32.mrf.mxu0 }
 0x19b   :  { %v264_v47 = vadd.f32 %v389_v43, %v263_v44  ;;  %v279_v50 = vmax.f32 %v272_v45, 0.0 }
 0x19c   :  { %v444_v46 = vpop.f32.mrf.mxu0 }
 0x19d   :  { %v277_v51 = vmax.f32 %v264_v47, 0.0  ;;  %v281_v54 = vpack.c.bf16 %v279_v50, %v279_v50 }
 0x19e   :  { %v266_v48 = vpop.f32.mrf.mxu0 }
 0x19f   :  { %v267_v49 = vadd.f32 %v389_v43, %v266_v48 }
 0x1a1   :  { %v278_v52 = vmax.f32 %v267_v49, 0.0 }
 0x1a3   :  { %v280_v53 = vpack.c.bf16 %v278_v52, %v277_v51 }
 0x1a5   :  { %453 = vmatprep.mubr.msk.bf16.mxu1 %vm222_vm3, %v280_v53 }
 0x1a6   :  { %454 = vmatmul.mubr.msk.bf16.vlgmr.msra.gmra.mxu1 %vm222_vm3, %v281_v54 }
 0x266   :  { %v455_v56 = vpop.f32.mrf.mxu1 }
 0x267   :  { %v370_v57 = vadd.f32 %v455_v56, %v396_v55 }
 0x268   :  { %v361_v58 = vpop.f32.mrf.mxu1 }
 0x269   :  { %378 = vst.msk [vmem:[%s596_s9 + $0x10] sm:$0xff] %vm375_vm4, %v370_v57  ;;  %v362_v59 = vadd.f32 %v396_v55, %v361_v58 }
 0x26a   :  { %v456_v60 = vpop.f32.mrf.mxu1 }
 0x26b   :  { %376 = vst.msk [vmem:[%s596_s9] sm:$0xff] %vm375_vm4, %v362_v59 }
 0x26c   :  { %v364_v61 = vpop.f32.mrf.mxu1 }
 0x26d   :  { %v365_v62 = vadd.f32 %v396_v55, %v364_v61 }
 0x26f   :  { %377 = vst.msk [vmem:[%s596_s9 + $0x8] sm:$0xff] %vm375_vm4, %v365_v62 }

</bundles_post_ra>
